<compile_context>
chip_gen: v7x
topology: tpu7x:2x2x1
jax: 0.10.0
libtpu: 0.0.40
codegen_flags: <defaults>
</compile_context>

<pallas_src>
import functools

import jax
import jax.numpy as jnp
from jax import lax
from jax.experimental import pallas as pl
from jax.experimental.pallas import tpu as pltpu

_LANE = 128
_SLAB = 16                                # inner-loop sublane slab (bf16-clean)
_MAX_ROWS_TILE = 512                      # max sublane rows per grid block
_TARGET_BLOCK_BYTES = (3 * 1024 * 1024) // 2   # ~1.5 MiB pred block -> ~HBM roofline
_VMEM_LIMIT_BYTES = 32 * 1024 * 1024      # safe on v5e/v6e/v7x (v7x phys = 64 MiB)


def _cdiv(a, b):
    return (a + b - 1) // b


def _round_up(a, b):
    return _cdiv(a, b) * b


def _choose_rows_tile(rows, cp1, itemsize, prefer_split):
    """Sublane rows per grid block: multiple of _SLAB, ~1-1.5 MiB pred DMA."""
    if rows <= _SLAB:
        return rows                        # full-extent tile, no (8,128) constraint
    bytes_per_row = cp1 * _LANE * itemsize
    max_rows = min(_TARGET_BLOCK_BYTES // bytes_per_row, _MAX_ROWS_TILE, rows)
    max_rows = max(_SLAB, (max_rows // _SLAB) * _SLAB)
    if prefer_split and rows >= 2 * _SLAB:
        # Keep >= 2 row tiles so the row axis supplies a second "parallel"
        # grid dimension (both v7x TensorCores busy even when B == 1).
        max_rows = max(_SLAB, min(max_rows, _round_up(_cdiv(rows, 2), _SLAB)))
    # Prefer a tile that divides `rows` exactly: no ragged last block, no mask.
    for cand in range(max_rows, max(_SLAB, max_rows // 2) - 1, -_SLAB):
        if rows % cand == 0:
            return cand
    return max_rows                        # ragged last block -> masked in-kernel


def _lse_with_zero_channel(body):
    """log(exp(0) + sum_c exp(body_c)) over channel axis 0; body: (C, S, 128)."""
    m = jnp.maximum(jnp.max(body, axis=0), 0.0)
    sumexp = jnp.exp(-m) + jnp.sum(jnp.exp(body - m[None]), axis=0)
    return jnp.log(sumexp) + m


def _positional_mask(loss_map, tile_row0, row_off, hw):
    row = lax.broadcasted_iota(jnp.int32, loss_map.shape, 0)
    lane = lax.broadcasted_iota(jnp.int32, loss_map.shape, 1)
    pos = (tile_row0 + row_off + row) * _LANE + lane
    return jnp.where(pos < hw, loss_map, 0.0)


def _loss_real_kernel(pred_ref, label_ref, out_ref, acc_ref, *, scale, hw,
                      rows_tile, slab, n_slabs, tiles_per_split, need_mask):
    """D-real / generator branch: loss = sum_c(-label_c * log_softmax(pred)_c)."""
    h = pl.program_id(1)
    r = pl.program_id(2)

    @pl.when(r == 0)
    def _():
        acc_ref[...] = jnp.zeros_like(acc_ref)

    tile_row0 = (h * tiles_per_split + r) * rows_tile

    def slab_loss(pred, label, row_off):
        body = pred[1:]                                   # channels 1..C
        lse = _lse_with_zero_channel(body)
        # label[:,0] == 0 and pred[:,0] == 0 in the reference, so per pixel:
        #   loss = sum_{c=1..C-1} label_c * (lse - pred_c)
        loss_map = jnp.sum(label[1:] * (lse[None] - body[:-1]), axis=0)
        if need_mask:
            loss_map = _positional_mask(loss_map, tile_row0, row_off, hw)
        return loss_map

    if n_slabs == 1:
        partial = slab_loss(pred_ref[0].astype(jnp.float32),
                            label_ref[0].astype(jnp.float32), 0)
    else:
        def body_fn(s, carry):
            i0 = pl.multiple_of(s * slab, slab)
            p = pred_ref[0, :, pl.ds(i0, slab), :].astype(jnp.float32)
            l = label_ref[0, :, pl.ds(i0, slab), :].astype(jnp.float32)
            return carry + slab_loss(p, l, i0)
        partial = lax.fori_loop(0, n_slabs, body_fn,
                                jnp.zeros((slab, _LANE), jnp.float32))

    acc_ref[...] += partial

    @pl.when(r == pl.num_programs(2) - 1)
    def _():
        total = jnp.sum(acc_ref[...]) * scale
        out_ref[...] = jnp.full(out_ref.shape, total, out_ref.dtype)


def _loss_fake_kernel(pred_ref, out_ref, acc_ref, *, scale, hw, rows_tile,
                      slab, n_slabs, tiles_per_split, need_mask):
    """D-fake branch: loss = -log_softmax(pred)[:, -1].  No label input."""
    h = pl.program_id(1)
    r = pl.program_id(2)

    @pl.when(r == 0)
    def _():
        acc_ref[...] = jnp.zeros_like(acc_ref)

    tile_row0 = (h * tiles_per_split + r) * rows_tile

    def slab_loss(pred, row_off):
        body = pred[1:]
        lse = _lse_with_zero_channel(body)
        loss_map = lse - body[-1]                         # -logp(fake channel)
        if need_mask:
            loss_map = _positional_mask(loss_map, tile_row0, row_off, hw)
        return loss_map

    if n_slabs == 1:
        partial = slab_loss(pred_ref[0].astype(jnp.float32), 0)
    else:
        def body_fn(s, carry):
            i0 = pl.multiple_of(s * slab, slab)
            p = pred_ref[0, :, pl.ds(i0, slab), :].astype(jnp.float32)
            return carry + slab_loss(p, i0)
        partial = lax.fori_loop(0, n_slabs, body_fn,
                                jnp.zeros((slab, _LANE), jnp.float32))

    acc_ref[...] += partial

    @pl.when(r == pl.num_programs(2) - 1)
    def _():
        total = jnp.sum(acc_ref[...]) * scale
        out_ref[...] = jnp.full(out_ref.shape, total, out_ref.dtype)


def _single_loss(input_x, t_real, weight, reduce_dim, dis_update):
    assert reduce_dim is True  # TODO(synk): reduce_dim=False path not implemented.
    pred = input_x['pred']
    label = input_x['label']
    B, Cp1, H, W = pred.shape
    _, C, _, _ = label.shape
    assert Cp1 == C + 1
    HW = H * W

    if not dis_update:
        assert t_real, 'GAN loss must be aiming for real.'
    fake_branch = bool(dis_update) and (not bool(t_real))

    w = 1.0 if weight is None else float(weight)
    scale = w / float(B * HW)          # torch.mean over the (B,1,H,W) loss map

    # Lane-dense spatial layout (B, C, rows, 128).  When HW % 128 == 0 this is
    # a free reshape (no pad copy); otherwise only a minimal pad to the next
    # lane boundary (the old full pad to a row-tile multiple is gone).
    rows = _cdiv(HW, _LANE)
    itemsize = jnp.dtype(pred.dtype).itemsize
    rows_tile = _choose_rows_tile(rows, Cp1, itemsize, prefer_split=(B == 1))
    slab = min(_SLAB, rows_tile)
    n_slabs = rows_tile // slab
    n_row_tiles = _cdiv(rows, rows_tile)
    split = 2 if (n_row_tiles >= 2 and n_row_tiles % 2 == 0) else 1
    tiles_per_split = n_row_tiles // split
    covered_hw = n_row_tiles * rows_tile * _LANE
    need_mask = covered_hw != HW       # ragged last tile and/or lane padding

    def to_planes(x, ch):
        x = x.reshape(B, ch, HW)
        if HW % _LANE != 0:
            # TODO(synk): a fully pad-free path for HW % 128 != 0 would need a
            # flat (B, C, HW) kernel layout; this pads only to the next lane.
            x = jnp.pad(x, ((0, 0), (0, 0), (0, rows * _LANE - HW)))
        return x.reshape(B, ch, rows, _LANE)

    pred4 = to_planes(pred, Cp1)

    row_block = lambda b, h, r: (b, 0, h * tiles_per_split + r, 0)
    pred_spec = pl.BlockSpec((1, Cp1, rows_tile, _LANE), row_block)
    out_shape = jax.ShapeDtypeStruct((B * split, 1, _LANE), jnp.float32)
    out_spec = pl.BlockSpec((1, 1, _LANE), lambda b, h, r: (b * split + h, 0, 0))
    scratch = [pltpu.VMEM((slab, _LANE), jnp.float32)]
    cparams = pltpu.CompilerParams(
        dimension_semantics=("parallel", "parallel", "arbitrary"),
        vmem_limit_bytes=_VMEM_LIMIT_BYTES)
    grid = (B, split, tiles_per_split)

    common = dict(scale=scale, hw=HW, rows_tile=rows_tile, slab=slab,
                  n_slabs=n_slabs, tiles_per_split=tiles_per_split,
                  need_mask=need_mask)

    if fake_branch:
        # label is never used in this branch: do not DMA it at all.
        kernel = functools.partial(_loss_fake_kernel, **common)
        out = pl.pallas_call(
            kernel,
            out_shape=out_shape,
            grid_spec=pltpu.PrefetchScalarGridSpec(
                num_scalar_prefetch=0,
                grid=grid,
                in_specs=[pred_spec],
                out_specs=out_spec,
                scratch_shapes=scratch),
            compiler_params=cparams,
        )(pred4)
    else:
        label4 = to_planes(label, C)
        label_spec = pl.BlockSpec((1, C, rows_tile, _LANE), row_block)
        kernel = functools.partial(_loss_real_kernel, **common)
        out = pl.pallas_call(
            kernel,
            out_shape=out_shape,
            grid_spec=pltpu.PrefetchScalarGridSpec(
                num_scalar_prefetch=0,
                grid=grid,
                in_specs=[pred_spec, label_spec],
                out_specs=out_spec,
                scratch_shapes=scratch),
            compiler_params=cparams,
        )(pred4, label4)

    # Per-(batch, split-half) partials already carry the weight/(B*HW) scale.
    return jnp.sum(out[:, 0, 0])


def gan_loss_fpse(input_x, t_real, weight=None, reduce_dim=True,
                  dis_update=True):
    """JAX/Pallas equivalent of GANLoss_fpse.forward (reduce_dim=True path)."""
    if isinstance(input_x, (list, tuple)):
        loss = jnp.float32(0.0)
        for pred_i in input_x:
            if isinstance(pred_i, (list, tuple)):
                pred_i = pred_i[-1]
            # reduce_dim=True -> scalar loss; view(1,-1).mean() is identity.
            loss = loss + _single_loss(pred_i, t_real, weight, reduce_dim,
                                       dis_update)
        return loss / len(input_x)
    return _single_loss(input_x, t_real, weight, reduce_dim, dis_update)


def _ref_loss(input_x, t_real, weight, dis_update):
    """Pure-JAX reference mirroring the PyTorch code."""
    pred = input_x['pred'].astype(jnp.float32)
    label = input_x['label'].astype(jnp.float32)
    pred = pred.at[:, 0].set(0.0)
    label = label.at[:, 0].set(0.0)
    logp = jax.nn.log_softmax(pred, axis=1)
    if dis_update and (not t_real):
        loss = -logp[:, -1:, :, :]
    else:
        loss = jnp.sum(-label * logp[:, :-1, :, :], axis=1, keepdims=True)
    if weight is not None:
        loss = loss * weight
    return jnp.mean(loss)


if __name__ == "__main__":
    key = jax.random.PRNGKey(0)
    ks = jax.random.split(key, 8)

    cases = [
        dict(t_real=True, weight=None, dis_update=True),    # D real
        dict(t_real=False, weight=2.0, dis_update=True),    # D fake (no label DMA)
        dict(t_real=True, weight=0.5, dis_update=False),    # G update
    ]

    def check(input_x, c, rtol=1e-5, atol=1e-5):
        out = jax.block_until_ready(
            gan_loss_fpse(input_x, c['t_real'], weight=c['weight'],
                          reduce_dim=True, dis_update=c['dis_update']))
        ref = _ref_loss(input_x, c['t_real'], c['weight'], c['dis_update'])
        assert jnp.allclose(out, ref, rtol=rtol, atol=atol), (c, out, ref)

    def make_inputs(k, b, ch, h, w):
        k1, k2 = jax.random.split(k)
        pred = jax.random.normal(k1, (b, ch + 1, h, w), jnp.float32)
        label = jax.nn.softmax(
            jax.random.normal(k2, (b, ch, h, w), jnp.float32), axis=1)
        return {'pred': pred, 'label': label}

    # 1) B=2, C=4, 16x16: HW=256 -> free reshape to 2 lane-dense rows, no mask.
    input_a = make_inputs(ks[0], 2, 4, 16, 16)
    for c in cases:
        check(input_a, c)

    # 2) odd spatial size (HW=63): minimal lane pad + in-kernel positional mask.
    input_b = make_inputs(ks[1], 2, 3, 7, 9)
    for c in cases:
        check(input_b, c)

    # 3) larger spatial size (HW=6400, rows=50): exercises the fori slab loop,
    #    the ragged (partial) last row tile with masking and the split row axis.
    input_c = make_inputs(ks[2], 2, 4, 80, 80)
    for c in cases[:2]:
        check(input_c, c, rtol=1e-4, atol=1e-5)

    # 4) B=1 with prefer_split: row axis supplies the second parallel grid dim.
    input_d = make_inputs(ks[3], 1, 4, 64, 64)
    check(input_d, cases[0], rtol=1e-4, atol=1e-5)

    # 5) bf16 inputs fed straight to the kernel (half the HBM traffic).
    input_bf16 = {'pred': input_a['pred'].astype(jnp.bfloat16),
                  'label': input_a['label'].astype(jnp.bfloat16)}
    check(input_bf16, cases[0], rtol=1e-4, atol=1e-4)

    # 6) multi-resolution (list) input path.
    pred2 = jax.random.normal(ks[4], input_a['pred'].shape, jnp.float32)
    multi = [input_a, [{'pred': pred2, 'label': input_a['label']}]]
    out_list = jax.block_until_ready(
        gan_loss_fpse(multi, True, weight=None, dis_update=True))
    ref_list = 0.5 * (_ref_loss(input_a, True, None, True)
                      + _ref_loss({'pred': pred2, 'label': input_a['label']},
                                  True, None, True))
    assert jnp.allclose(out_list, ref_list, rtol=1e-5, atol=1e-5)

    print("KERNEL_OK")
</pallas_src>

<mosaic_0001>
module attributes {stable_mosaic.version = 11 : i64} {
  func.func @_loss_real_kernel(%arg0: i32, %arg1: i32, %arg2: i32, %arg3: memref<1x5x2x128xf32, #tpu.memory_space<vmem>>, %arg4: memref<1x4x2x128xf32, #tpu.memory_space<vmem>>, %arg5: memref<1x1x128xf32, #tpu.memory_space<vmem>>, %arg6: memref<2x128xf32, #tpu.memory_space<vmem>>) attributes {dimension_semantics = [#tpu.dimension_semantics<parallel>, #tpu.dimension_semantics<parallel>, #tpu.dimension_semantics<arbitrary>], iteration_bounds = array<i64: 2, 1, 1>, scalar_prefetch = 0 : i64, scratch_operands = 1 : i64, tpu.core_type = #tpu.core_type<tc>, window_params = [{transform_indices = @transform_0, window_bounds = array<i64: 1, 5, 2, 128>}, {transform_indices = @transform_1, window_bounds = array<i64: 1, 4, 2, 128>}, {transform_indices = @transform_2, window_bounds = array<i64: 1, 1, 128>}]} {
    %c0_i32 = arith.constant 0 : i32
    %0 = arith.cmpi eq, %arg2, %c0_i32 : i32
    %1 = arith.extui %0 : i1 to i32
    %c0_i32_0 = arith.constant 0 : i32
    %2 = arith.cmpi ne, %1, %c0_i32_0 : i32
    scf.if %2 {
      %cst_18 = arith.constant 0.000000e+00 : f32
      %35 = vector.broadcast %cst_18 : f32 to vector<2x128xf32>
      %c0_19 = arith.constant 0 : index
      %c0_20 = arith.constant 0 : index
      %36 = vector.load %arg6[%c0_19, %c0_20] : memref<2x128xf32, #tpu.memory_space<vmem>>, vector<2x128xf32>
      tpu.vector_store %arg6[%c0_19, %c0_20], %35 {strides = array<i32>} : memref<2x128xf32, #tpu.memory_space<vmem>>, vector<2x128xf32>,
    } else {
    }
    %c0 = arith.constant 0 : index
    %c0_1 = arith.constant 0 : index
    %c0_2 = arith.constant 0 : index
    %c0_3 = arith.constant 0 : index
    %3 = vector.load %arg3[%c0, %c0_1, %c0_2, %c0_3] : memref<1x5x2x128xf32, #tpu.memory_space<vmem>>, vector<1x5x2x128xf32>
    %4 = vector.shape_cast %3 : vector<1x5x2x128xf32> to vector<5x2x128xf32>
    %c0_4 = arith.constant 0 : index
    %c0_5 = arith.constant 0 : index
    %c0_6 = arith.constant 0 : index
    %c0_7 = arith.constant 0 : index
    %5 = vector.load %arg4[%c0_4, %c0_5, %c0_6, %c0_7] : memref<1x4x2x128xf32, #tpu.memory_space<vmem>>, vector<1x4x2x128xf32>
    %6 = vector.shape_cast %5 : vector<1x4x2x128xf32> to vector<4x2x128xf32>
    %7 = vector.extract_strided_slice %4 {offsets = [1, 0, 0], sizes = [4, 2, 128], strides = [1, 1, 1]} : vector<5x2x128xf32> to vector<4x2x128xf32>
    %cst = arith.constant dense<0xFF800000> : vector<2x128xf32>
    %8 = vector.multi_reduction <maximumf>, %7, %cst [0] : vector<4x2x128xf32> to vector<2x128xf32>
    %cst_8 = arith.constant 0.000000e+00 : f32
    %9 = vector.broadcast %cst_8 : f32 to vector<2x128xf32>
    %10 = arith.maximumf %8, %9 : vector<2x128xf32>
    %cst_9 = arith.constant 0.000000e+00 : f32
    %11 = vector.broadcast %cst_9 : f32 to vector<2x128xf32>
    %12 = arith.subf %11, %10 : vector<2x128xf32>
    %13 = math.exp %12 : vector<2x128xf32>
    %14 = vector.shape_cast %10 : vector<2x128xf32> to vector<1x2x128xf32>
    %15 = vector.broadcast %14 : vector<1x2x128xf32> to vector<4x2x128xf32>
    %16 = arith.subf %7, %15 : vector<4x2x128xf32>
    %17 = math.exp %16 : vector<4x2x128xf32>
    %cst_10 = arith.constant dense<0.000000e+00> : vector<2x128xf32>
    %18 = vector.multi_reduction <add>, %17, %cst_10 [0] : vector<4x2x128xf32> to vector<2x128xf32>
    %19 = arith.addf %13, %18 : vector<2x128xf32>
    %20 = math.log %19 : vector<2x128xf32>
    %21 = arith.addf %20, %10 : vector<2x128xf32>
    %22 = vector.extract_strided_slice %6 {offsets = [1, 0, 0], sizes = [3, 2, 128], strides = [1, 1, 1]} : vector<4x2x128xf32> to vector<3x2x128xf32>
    %23 = vector.shape_cast %21 : vector<2x128xf32> to vector<1x2x128xf32>
    %24 = vector.extract_strided_slice %7 {offsets = [0, 0, 0], sizes = [3, 2, 128], strides = [1, 1, 1]} : vector<4x2x128xf32> to vector<3x2x128xf32>
    %25 = vector.broadcast %23 : vector<1x2x128xf32> to vector<3x2x128xf32>
    %26 = arith.subf %25, %24 : vector<3x2x128xf32>
    %27 = arith.mulf %22, %26 : vector<3x2x128xf32>
    %cst_11 = arith.constant dense<0.000000e+00> : vector<2x128xf32>
    %28 = vector.multi_reduction <add>, %27, %cst_11 [0] : vector<3x2x128xf32> to vector<2x128xf32>
    %c0_12 = arith.constant 0 : index
    %c0_13 = arith.constant 0 : index
    %29 = vector.load %arg6[%c0_12, %c0_13] : memref<2x128xf32, #tpu.memory_space<vmem>>, vector<2x128xf32>
    %30 = arith.addf %29, %28 : vector<2x128xf32>
    %c0_14 = arith.constant 0 : index
    %c0_15 = arith.constant 0 : index
    %31 = vector.load %arg6[%c0_14, %c0_15] : memref<2x128xf32, #tpu.memory_space<vmem>>, vector<2x128xf32>
    tpu.vector_store %arg6[%c0_14, %c0_15], %30 {strides = array<i32>} : memref<2x128xf32, #tpu.memory_space<vmem>>, vector<2x128xf32>,
    %c0_i32_16 = arith.constant 0 : i32
    %32 = arith.cmpi eq, %arg2, %c0_i32_16 : i32
    %33 = arith.extui %32 : i1 to i32
    %c0_i32_17 = arith.constant 0 : i32
    %34 = arith.cmpi ne, %33, %c0_i32_17 : i32
    scf.if %34 {
      %c0_18 = arith.constant 0 : index
      %c0_19 = arith.constant 0 : index
      %35 = vector.load %arg6[%c0_18, %c0_19] : memref<2x128xf32, #tpu.memory_space<vmem>>, vector<2x128xf32>
      %36 = vector.shape_cast %35 : vector<2x128xf32> to vector<1x2x128xf32>
      %cst_20 = arith.constant dense<0.000000e+00> : vector<1xf32>
      %37 = vector.multi_reduction <add>, %36, %cst_20 [1, 2] : vector<1x2x128xf32> to vector<1xf32>
      %38 = vector.shape_cast %37 : vector<1xf32> to vector<1x1x1xf32>
      %39 = vector.extract %38[0, 0, 0] : f32 from vector<1x1x1xf32>
      %cst_21 = arith.constant 0.001953125 : f32
      %40 = arith.mulf %39, %cst_21 : f32
      %41 = vector.broadcast %40 : f32 to vector<1x1x128xf32>
      %c0_22 = arith.constant 0 : index
      %c0_23 = arith.constant 0 : index
      %c0_24 = arith.constant 0 : index
      %42 = vector.load %arg5[%c0_22, %c0_23, %c0_24] : memref<1x1x128xf32, #tpu.memory_space<vmem>>, vector<1x1x128xf32>
      tpu.vector_store %arg5[%c0_22, %c0_23, %c0_24], %41 {strides = array<i32>} : memref<1x1x128xf32, #tpu.memory_space<vmem>>, vector<1x1x128xf32>,
    } else {
    }
    return
  }
  func.func @transform_0(%arg0: i32, %arg1: i32, %arg2: i32) -> (i32, i32, i32, i32) {
    %c1_i32 = arith.constant 1 : i32
    %0 = arith.muli %arg1, %c1_i32 : i32
    %1 = arith.addi %0, %arg2 : i32
    %c0_i32 = arith.constant 0 : i32
    %c0_i32_0 = arith.constant 0 : i32
    %c0_i32_1 = arith.constant 0 : i32
    return %arg0, %c0_i32, %1, %c0_i32_0 : i32, i32, i32, i32
  }
  func.func @transform_1(%arg0: i32, %arg1: i32, %arg2: i32) -> (i32, i32, i32, i32) {
    %c1_i32 = arith.constant 1 : i32
    %0 = arith.muli %arg1, %c1_i32 : i32
    %1 = arith.addi %0, %arg2 : i32
    %c0_i32 = arith.constant 0 : i32
    %c0_i32_0 = arith.constant 0 : i32
    %c0_i32_1 = arith.constant 0 : i32
    return %arg0, %c0_i32, %1, %c0_i32_0 : i32, i32, i32, i32
  }
  func.func @transform_2(%arg0: i32, %arg1: i32, %arg2: i32) -> (i32, i32, i32) {
    %c1_i32 = arith.constant 1 : i32
    %0 = arith.muli %arg0, %c1_i32 : i32
    %1 = arith.addi %0, %arg1 : i32
    %c0_i32 = arith.constant 0 : i32
    %c0_i32_0 = arith.constant 0 : i32
    %c0_i32_1 = arith.constant 0 : i32
    return %1, %c0_i32, %c0_i32_0 : i32, i32, i32
  }
}

</mosaic_0001>

<bundles_post_ra>
// kernel: tpu_custom_call.1
= control target key start
LH: loop header
LB: loop body
LE: loop exit
PB: predicated region body
PF: predicated region fallthrough
CT: control target
= control target key end

     0   :  { %7 = vsyncpa [#allocation4], 0  ;;  %s953_s0 = inlined_call_operand.hbm [shape: f32[2,5,2,128], index: 0, kind: input, shape index: {}]   ;;  %s954_s1 = inlined_call_operand.hbm [shape: f32[2,4,2,128], index: 1, kind: input, shape index: {}]   ;;  %s955_s2 = inlined_call_operand.hbm [shape: f32[2,1,128], index: 2, kind: output, shape index: {}]  }
   0x1   :  { %9 = vsyncpa [#allocation4 + $0x1], 0 }
   0x2   :  { %10 = vsyncpa [#allocation7], 0 }
   0x3   :  { %12 = vsyncpa [#allocation7 + $0x1], 0 }
   0x4   :  { %13 = vsyncpa [#allocation5], 0 }
   0x5   :  { %15 = vsyncpa [#allocation5 + $0x1], 0  ;;  %s706_s9 = smov 0   ;;  %s708_s10 = smov 0  }
   0x6   :  { %s710_s11 = smov 0   ;;  %s712_s12 = smov 0  }
   0x7   :  { %s714_s13 = smov 0   ;;  %s716_s14 = smov 0  }
   0x8 LB: > { %s436_s15 = sadd.s32 4294967295, %s683_s14   ;;  %s437_s16 = sadd.s32 4294967294, %s683_s14   ;;  %s683_s14 = sphi %s716_s14, %s21_s14   ;;  %s679_s13 = sphi %s714_s13, %s973_s13   ;;  %s675_s12 = sphi %s712_s12, %s972_s12   ;;  %s671_s11 = sphi %s710_s11, %s971_s11   ;;  %s667_s10 = sphi %s708_s10, %s970_s10   ;;  %s663_s9 = sphi %s706_s9, %s969_s9  }
   0x9   : > { %s40_s17 = sadd.s32 1, %s679_s13  ;;  %s51_s18 = sadd.s32 1, %s671_s11 }
   0xa   : > { %p42_p0 = scmp.ge.s32.totalorder %s40_s17, 2  ;;  %p58_p1 = scmp.ne.s32.totalorder %s671_s11, %s667_s10 }
   0xb   : > { %p59_p2 = scmp.eq.s32.totalorder %s683_s14, 0  ;;  %p64_p3 = scmp.ne.s32.totalorder %s667_s10, %s663_s9 }
   0xc   : > { %s975_s17 = smov (%p42_p0, %s40_s17), 0  ;;  %p65_p5 = scmp.eq.s32.totalorder %s436_s15, 0 }
   0xd   : > { %p747_p4 = por %p59_p2, %p58_p1  ;;  %s46_s20 = ssub.s32 %s679_s13, %s975_s17 }
   0xe   : > { %p120_p6 = scmp.eq.s32.totalorder %s436_s15, 1  ;;  %p49_p7 = scmp.eq.s32.totalorder %s46_s20, 0 }
   0xf   : > { %p753_p8 = por %p65_p5, %p64_p3  ;;  %p126_p10 = scmp.eq.s32.totalorder %s437_s16, 1 }
  0x10   : > { %p757_p9 = por %p120_p6, %p58_p1  ;;  %p472_p13 = scmp.lt.s32.totalorder %s683_s14, 2 }
  0x11   : > { %s959_s21 = scalar_select %p753_p8, 1, 0 }
  0x12   : > { %s960_s22 = scalar_select %p757_p9, 1, 0 }
  0x13   : > { %s762_s23 = scalar_select %p49_p7, %s671_s11, %s51_s18  }
  0x14   : > { %p764_p11 = por %p126_p10, %p64_p3  ;;  %s771_s25 = sand.u32 1, %s671_s11  }
  0x15   : > { %s450_s26 = smul.u32 10, %s771_s25  ;;  %p777_p0 = pnand %p472_p13, %p747_p4 }
  0x16   : > { %s961_s24 = scalar_select %p764_p11, 1, 0 }
  0x17   : > { %s451_s27 = smul.u32 160, %s679_s13  ;;  %s150_s4 = scalar_lea.vmem [#allocation3], %s450_s26 }
  0x18   : > { %s159_s5 = sshll.u32 %s150_s4, 4  ;;  %s147_s6 = scalar_lea.sflag [#allocation4], %s771_s25  ;;  %s786_s5 = int_to_ptr.vmem [resolvable:$true] %s159_s5 }
  0x19   : > { %s784_s3 = scalar_lea.hbm %s953_s0, %s451_s27  ;;  %p539_p3 = pneg %p777_p0 }
  0x1a   : > { %s537_s7 = scalar_lea.hbm %s784_s3, 160  ;;  %s542_s16 = scalar_lea.hbm %s953_s0, 320 }
  0x1b   : > { %p538_p2 = scmp.ne.s32.totalorder %s784_s3, %s537_s7  ;;  %p543_p6 = scmp.lt.u32.totalorder %s784_s3, %s953_s0 }
  0x1c   : > { %p544_p7 = scmp.lt.u32.totalorder %s542_s16, %s537_s7  ;;  %p546_p13 = scmp.lt.u32.totalorder %s537_s7, %s784_s3 }
  0x1d   : > { %p540_p4 = pnand %p539_p3, %p538_p2 }
  0x1e   : > { %p545_p10 = por %p544_p7, %p543_p6 }
  0x1f   : > { %p541_p5 = pneg %p540_p4 }
  0x20   : > { %p547_p12 = por %p546_p13, %p545_p10 }
  0x22   : > { %p548_p1 = pnand %p547_p12, %p541_p5 }
  0x24   : > { %551 = shalt.err (!%p548_p1)
}
  0x25   : > { %s552_s20 = scalar_lea.vmem %s786_s5, 160  ;;  %s685_s26 = smov [#allocation3]  }
  0x26   : > { %p553_p2 = scmp.ne.s32.totalorder %s786_s5, %s552_s20  ;;  %s557_s27 = sshll.u32 %s685_s26, 4  ;;  %s558_s27 = int_to_ptr.vmem [resolvable:$false] %s557_s27 }
  0x27   : > { %s559_s29 = scalar_lea.vmem %s558_s27, 320  ;;  %p560_p9 = scmp.lt.s32.totalorder %s786_s5, %s558_s27 }
  0x28   : > { %p555_p4 = pnand %p553_p2, %p539_p3  ;;  %p561_p6 = scmp.lt.s32.totalorder %s559_s29, %s552_s20 }
  0x2a   : > { %p556_p11 = pneg %p555_p4  ;;  %p562_p7 = por %p561_p6, %p560_p9 }
  0x2c   : > { %p563_p10 = pnand %p562_p7, %p556_p11 }
  0x2e   : > { %566 = shalt.err (!%p563_p10)
}
  0x2f   : > { %s686_s30 = smov 32   ;;  %s687_s4 = smov 2  }
  0x30   : > { %464 = dma.hbm_to_vmem [thread:$0]  (!%p777_p0), %s784_s3, 160, %s786_s5, %s147_s6, %s686_s30, %s686_s30, %s687_s4  }
  0x31   : > { %p190_p9 = scmp.lt.s32.totalorder %s683_s14, 3  ;;  %s441_s7 = sshll.u32 %s771_s25, 3 }
  0x32   : > { %s449_s8 = sshll.u32 %s679_s13, 7  ;;  %p963_p11 = scmp.ge.s32.totalorder %s683_s14, 1 }
  0x33   : > { %s832_s19 = scalar_lea.hbm %s954_s1, %s449_s8  ;;  %s173_s20 = scalar_lea.vmem [#allocation6], %s441_s7 }
  0x34   : > { %p825_p12 = pnand %p963_p11, %p190_p9  ;;  %s182_s26 = sshll.u32 %s173_s20, 4  ;;  %s834_s26 = int_to_ptr.vmem [resolvable:$true] %s182_s26 }
  0x35   : > { %s170_s3 = scalar_lea.sflag [#allocation7], %s771_s25  ;;  %s567_s5 = scalar_lea.hbm %s832_s19, 128 }
  0x36   : > { %p568_p1 = scmp.ne.s32.totalorder %s832_s19, %s567_s5  ;;  %s572_s29 = scalar_lea.hbm %s954_s1, 256 }
  0x37   : > { %p573_p2 = scmp.lt.u32.totalorder %s832_s19, %s954_s1  ;;  %p574_p4 = scmp.lt.u32.totalorder %s572_s29, %s567_s5 }
  0x38   : > { %p570_p5 = pnand %p568_p1, %p539_p3  ;;  %p576_p7 = scmp.lt.u32.totalorder %s567_s5, %s832_s19 }
  0x39   : > { %p575_p6 = por %p574_p4, %p573_p2 }
  0x3a   : > { %p571_p13 = pneg %p570_p5 }
  0x3b   : > { %p577_p10 = por %p576_p7, %p575_p6 }
  0x3d   : > { %p578_p9 = pnand %p577_p10, %p571_p13 }
  0x3f   : > { %581 = shalt.err (!%p578_p9)
}
  0x40   : > { %s582_s7 = scalar_lea.vmem %s834_s26, 128  ;;  %s688_s18 = smov [#allocation6]  }
  0x41   : > { %p583_p11 = scmp.ne.s32.totalorder %s834_s26, %s582_s7  ;;  %s587_s20 = sshll.u32 %s688_s18, 4  ;;  %s588_s20 = int_to_ptr.vmem [resolvable:$false] %s587_s20 }
  0x42   : > { %s589_s6 = scalar_lea.vmem %s588_s20, 256  ;;  %p590_p8 = scmp.lt.s32.totalorder %s834_s26, %s588_s20 }
  0x43   : > { %p585_p1 = pnand %p583_p11, %p539_p3  ;;  %p591_p2 = scmp.lt.s32.totalorder %s589_s6, %s582_s7 }
  0x45   : > { %p586_p5 = pneg %p585_p1  ;;  %p592_p4 = por %p591_p2, %p590_p8 }
  0x47   : > { %p593_p6 = pnand %p592_p4, %p586_p5 }
  0x49   : > { %596 = shalt.err (!%p593_p6)
}
  0x4a   : > { %467 = dma.hbm_to_vmem [thread:$0]  (!%p777_p0), %s832_s19, 128, %s834_s26, %s170_s3, %s686_s30, %s686_s30, %s687_s4  }
  0x4b   : > { %194 = sbr.rel (%p825_p12) target bundleno = 377 (0x179), region = 28  ;;  %s868_s5 = sand.u32 (!%p825_p12), 1, %s667_s10  }
  0x4c   : > { %s452_s27 = smul.u32 (!%p825_p12), 10, %s868_s5  ;;  %s197_s29 = scalar_lea.sflag (!%p825_p12), [#allocation4], %s868_s5 }
  0x4d   : > { %p965_p8 = scmp.ne.s32.totalorder (!%p825_p12), %s959_s21, 0 }
  0x4e   : > { %s200_s28 = scalar_lea.vmem (!%p825_p12), [#allocation3], %s452_s27 }
  0x52   : > { %650 = dma.done.wait (%p965_p8), %s197_s29, 160  }
  0x53   : > { %652 = vsyncadd (%p965_p8), %s197_s29, 4294967136  ;;  %s445_s25 = sshll.u32 %s868_s5, 3  ;;  %s206_s30 = scalar_lea.sflag [#allocation7], %s868_s5 }
  0x54   : > { %s878_s4 = scalar_lea.vmem [#allocation6], %s445_s25 }
  0x55   : > { %654 = dma.done.wait (%p965_p8), %s206_s30, 128  }
  0x56   : > { %656 = vsyncadd (%p965_p8), %s206_s30, 4294967168  ;;  %v689_v0 = vmov 0.0   ;;  %vm249_vm0 = vcmask 1041408   ;;  %v242_v1 = vld [vmem:[%s200_s28 + $0x2] sm:$0x3]  ;;  %s233_s21 = scalar_lea.vmem [#allocation8], %s868_s5 }
  0x57   : > { %241 = vst [vmem:[#allocation2] sm:$0x3] %v689_v0  ;;  %v243_v2 = vld [vmem:[%s200_s28 + $0x4] sm:$0x3]  ;;  %v244_v3 = vld [vmem:[%s200_s28 + $0x6] sm:$0x3] }
  0x58   : > { %v245_v4 = vld [vmem:[%s200_s28 + $0x8] sm:$0x3]  ;;  %v250_v5 = vsel %vm249_vm0, %v242_v1, -inf  ;;  %v251_v6 = vsel %vm249_vm0, %v243_v2, -inf  ;;  %v252_v7 = vsel %vm249_vm0, %v244_v3, -inf  ;;  %s329_s15 = sshll.u32 %s233_s21, 4  ;;  %s906_s15 = int_to_ptr.vmem [resolvable:$true] %s329_s15 }
  0x59   : > { %v253_v8 = vsel %vm249_vm0, %v245_v4, -inf  ;;  %v254_v9 = vmax.f32 %v250_v5, %v251_v6  ;;  %v246_v39 = vld [vmem:[%s878_s4 + $0x2] sm:$0x3]  ;;  %v247_v40 = vld [vmem:[%s878_s4 + $0x4] sm:$0x3]  ;;  %s446_s19 = sshll.u32 %s675_s12, 4 }
  0x5a   : > { %v255_v10 = vmax.f32 %v252_v7, %v253_v8  ;;  %v248_v41 = vld [vmem:[%s878_s4 + $0x6] sm:$0x3]  ;;  %s904_s7 = scalar_lea.hbm %s955_s2, %s446_s19  ;;  %s316_s18 = scalar_lea.sflag [#allocation5], %s868_s5 }
  0x5b   : > { %s597_s20 = scalar_lea.vmem %s906_s15, 16  ;;  %p966_p3 = scmp.ne.s32.totalorder %s960_s22, 0 }
  0x5c   : > { %v256_v11 = vmax.f32 %v254_v9, %v255_v10  ;;  %p598_p0 = scmp.ne.s32.totalorder %s906_s15, %s597_s20  ;;  %s690_s12 = smov [#allocation8]  }
  0x5d   : > { %s601_s6 = sshll.u32 %s690_s12, 4  ;;  %s602_s6 = int_to_ptr.vmem [resolvable:$false] %s601_s6 }
  0x5e   : > { %v257_v12 = vmax.f32 %v256_v11, 0.0  ;;  %v295_v52 = vld [vmem:[#allocation2] sm:$0x3]  ;;  %p599_p12 = pnand %p598_p0, %p966_p3  ;;  %s603_s27 = scalar_lea.vmem %s602_s6, 32 }
  0x5f   : > { %p604_p7 = scmp.lt.s32.totalorder %s906_s15, %s602_s6  ;;  %p605_p10 = scmp.lt.s32.totalorder %s603_s27, %s597_s20 }
  0x60   : > { %v261_v13 = vsub.f32 %v242_v1, %v257_v12  ;;  %v262_v14 = vsub.f32 %v243_v2, %v257_v12  ;;  %v263_v15 = vsub.f32 %v244_v3, %v257_v12  ;;  %v264_v16 = vsub.f32 %v245_v4, %v257_v12  ;;  %p600_p13 = pneg %p599_p12 }
  0x61   : > { %v258_v19 = vsub.f32 0.0, %v257_v12  ;;  %p606_p9 = por %p605_p10, %p604_p7 }
  0x62   : > { %v265_v17 = vmul.f32 1.442695, %v261_v13  ;;  %v267_v18 = vmul.f32 1.442695, %v262_v14  ;;  %v269_v20 = vmul.f32 1.442695, %v263_v15 }
  0x63   : > { %v271_v21 = vmul.f32 1.442695, %v264_v16  ;;  %v259_v22 = vmul.f32 1.442695, %v258_v19  ;;  %p607_p11 = pnand %p606_p9, %p600_p13 }
  0x64   : > { %525 = vpow2.f32 %v265_v17 }
  0x65   : > { %527 = vpow2.f32 %v267_v18 }
  0x66   : > { %529 = vpow2.f32 %v269_v20 }
  0x67   : > { %531 = vpow2.f32 %v271_v21 }
  0x68   : > { %533 = vpow2.f32 %v259_v22 }
  0x6e   : > { %v526_v23 = vpop.eup %525 }
  0x6f   : > { %v528_v24 = vpop.eup %527  ;;  %v273_v25 = vsel %vm249_vm0, %v526_v23, 0.0 }
  0x70   : > { %v530_v26 = vpop.eup %529  ;;  %v274_v27 = vsel %vm249_vm0, %v528_v24, 0.0 }
  0x71   : > { %v532_v28 = vpop.eup %531  ;;  %v275_v29 = vadd.f32 %v274_v27, %v273_v25  ;;  %v276_v30 = vsel %vm249_vm0, %v530_v26, 0.0 }
  0x72   : > { %v278_v31 = vsel %vm249_vm0, %v532_v28, 0.0  ;;  %v534_v33 = vpop.eup %533 }
  0x73   : > { %v277_v32 = vadd.f32 %v276_v30, %v275_v29 }
  0x75   : > { %v279_v34 = vadd.f32 %v278_v31, %v277_v32 }
  0x77   : > { %v280_v35 = vadd.f32 %v534_v33, %v279_v34 }
  0x79   : > { %535 = vlog2.f32 %v280_v35 }
  0x83   : > { %v536_v36 = vpop.eup %535 }
  0x84   : > { %v282_v37 = vmul.f32 0.6931472, %v536_v36 }
  0x86   : > { %v283_v38 = vadd.f32 %v282_v37, %v257_v12 }
  0x88   : > { %v284_v42 = vsub.f32 %v283_v38, %v242_v1  ;;  %v285_v43 = vsub.f32 %v283_v38, %v243_v2  ;;  %v286_v44 = vsub.f32 %v283_v38, %v244_v3 }
  0x8a   : > { %v287_v45 = vmul.f32 %v284_v42, %v246_v39  ;;  %v288_v46 = vmul.f32 %v285_v43, %v247_v40  ;;  %v289_v47 = vmul.f32 %v286_v44, %v248_v41 }
  0x8c   : > { %v290_v48 = vsel %vm249_vm0, %v287_v45, 0.0  ;;  %v291_v49 = vsel %vm249_vm0, %v288_v46, 0.0  ;;  %v293_v50 = vsel %vm249_vm0, %v289_v47, 0.0 }
  0x8d   : > { %v292_v51 = vadd.f32 %v291_v49, %v290_v48 }
  0x8f   : > { %v294_v53 = vadd.f32 %v293_v50, %v292_v51 }
  0x91   : > { %v296_v54 = vadd.f32 %v295_v52, %v294_v53 }
  0x93   : > { %297 = vst [vmem:[#allocation2] sm:$0x3] %v296_v54 }
  0x9a   : > { %v301_v55 = vld [vmem:[#allocation2] sm:$0x3] }
  0x9b   : > { %v302_v56 = vsel %vm249_vm0, %v301_v55, 0.0 }
  0x9c   : > { %303 = vadd.xlane.f32.xlu0 %v302_v56 }
 0x129   : > { %v304_v57 = vpop.xlane.xlu0 %303 }
 0x12a   : > { %v305_v58 = vrot.slane %v304_v57, 4 }
 0x12c   : > { %v306_v59 = vadd.f32 %v305_v58, %v304_v57 }
 0x12e   : > { %v307_v60 = vrot.slane %v306_v59, 2 }
 0x130   : > { %v308_v61 = vadd.f32 %v307_v60, %v306_v59 }
 0x132   : > { %v309_v62 = vrot.slane %v308_v61, 1 }
 0x134   : > { %v310_v63 = vadd.f32 %v309_v62, %v308_v61 }
 0x136   : > { %453 = vpush %v310_v63 }
 0x167   : > { %s454_s26 = spop %453 }
 0x168   : > { %s312_s3 = smul.f32 0.001953125, %s454_s26 }
 0x16a   : > { %v313_v0 = vstv %s312_s3 }
 0x16b   : > { %314 = vst [vmem:[%s233_s21] sm:$0x1] %v313_v0 }
 0x16c   : > { %610 = shalt.err (!%p607_p11)
}
 0x16d   : > { %s611_s5 = scalar_lea.hbm %s904_s7, 16  ;;  %s615_s25 = scalar_lea.hbm %s955_s2, 32 }
 0x16e   : > { %p612_p1 = scmp.ne.s32.totalorder %s904_s7, %s611_s5  ;;  %p616_p4 = scmp.lt.u32.totalorder %s904_s7, %s955_s2 }
 0x16f   : > { %p617_p6 = scmp.lt.u32.totalorder %s615_s25, %s611_s5  ;;  %p619_p0 = scmp.lt.u32.totalorder %s611_s5, %s904_s7 }
 0x170   : > { %p613_p5 = pnand %p612_p1, %p966_p3 }
 0x171   : > { %p618_p8 = por %p617_p6, %p616_p4 }
 0x172   : > { %p614_p2 = pneg %p613_p5 }
 0x173   : > { %p620_p12 = por %p619_p0, %p618_p8 }
 0x175   : > { %p621_p13 = pnand %p620_p12, %p614_p2 }
 0x177   : > { %624 = shalt.err (!%p621_p13)
}
 0x178   : > { %459 = dma.vmem_to_hbm [thread:$0]  (%p966_p3), %s906_s15, 16, %s904_s7, %s316_s18  }
 0x179 PF: > { %s341_s21 = sand.u32 1, %s663_s9   ;;  %p967_p7 = scmp.ne.s32.totalorder %s961_s24, 0 }
 0x17a   : > { %p968_p10 = scmp.ge.s32.totalorder %s683_s14, 2  ;;  %s342_s19 = scalar_lea.sflag [#allocation5], %s341_s21 }
 0x17c   : > { %p469_p9 = pnand %p968_p10, %p967_p7 }
 0x17e   : > { %658 = dma.done.wait (!%p469_p9), %s342_s19, 16  }
 0x17f   : > { %660 = vsyncadd (!%p469_p9), %s342_s19, 4294967280  ;;  %s21_s14 = sadd.s32 1, %s683_s14   ;;  %s969_s9 = smov %s667_s10 }
 0x180   : > { %p18_p11 = scmp.ge.s32.totalorder %s21_s14, 4   ;;  %s970_s10 = smov %s671_s11 }
 0x181   : > { %s971_s11 = smov %s762_s23  ;;  %s972_s12 = smov %s679_s13 }
 0x182   : > { %s973_s13 = smov %s975_s17  ;;  %20 = sbr.rel (!%p18_p11) target bundleno = 8 (0x8), region = 94 }
 0x189   :  { %346 = vsyncpa [#allocation4], 1 }
 0x18a   :  { %348 = vsyncpa [#allocation4 + $0x1], 1 }
 0x18b   :  { %349 = vsyncpa [#allocation7], 1 }
 0x18c   :  { %351 = vsyncpa [#allocation7 + $0x1], 1 }
 0x18d   :  { %352 = vsyncpa [#allocation5], 1 }
 0x18e   :  { %354 = vsyncpa [#allocation5 + $0x1], 1 }

</bundles_post_ra>
